<compile_context>
chip_gen: v6e
topology: v6e:2x2x1
jax: 0.10.0
libtpu: 0.0.40
codegen_flags: <defaults>
</compile_context>

<pallas_src>
import functools

import jax
import jax.numpy as jnp
from jax.experimental import pallas as pl
from jax.experimental.pallas import tpu as pltpu


def _round_up(x: int, m: int) -> int:
    return (x + m - 1) // m * m


def _odefunc_node_kernel(s_ref, tst0_ref, z_ref, tw_ref, ph_ref, w_ref, b_ref,
                         dz_ref, *, start_time: float, inv_span: float):
    # s: scalar integration variable, kept in SMEM.
    s = s_ref[0]

    tst0 = tst0_ref[...]                          # (TM, 2) f32: [ts | t_0]
    ts = tst0[:, 0:1]
    t0 = tst0[:, 1:2]
    ratio = (ts - t0) * inv_span                  # (TM, 1)
    t = (s - start_time) * ratio + t0             # (TM, 1)

    # Sinusoidal time encoding cos(t * w + phi) -> (TM, z_dim)   (VPU/EUP, f32)
    t_enc = jnp.cos(t * tw_ref[...] + ph_ref[...])

    # latent_odefunc: Tanh(Linear(z + t_enc)) * ratio -> (TM, h_dim)
    h = z_ref[...].astype(jnp.float32) + t_enc
    pre = jnp.dot(h.astype(w_ref.dtype), w_ref[...],          # MXU (bf16 or f32)
                  preferred_element_type=jnp.float32) + b_ref[...]
    dz_ref[...] = (jnp.tanh(pre) * ratio).astype(dz_ref.dtype)


def prepare_odefunc_node_params(time_w, time_phase, w, b, *, param_dtype=jnp.float32):
    """One-time parameter preparation (hoisted out of the per-eval hot path).

    time_w, time_phase: (1, z_dim) sinusoidal TimeEncode params (kept f32: cos is f32).
    w: (h_dim, z_dim) nn.Linear weight; b: (h_dim,) bias.
    param_dtype: dtype for the matmul weight stream (bf16 halves its HBM bytes).
    """
    h_dim, z_dim = w.shape
    tw = jnp.asarray(time_w, jnp.float32).reshape(1, z_dim)
    ph = jnp.asarray(time_phase, jnp.float32).reshape(1, z_dim)
    wt = jnp.asarray(w, param_dtype).T.reshape(z_dim, h_dim)    # MXU-ready W.T
    b2 = jnp.asarray(b, jnp.float32).reshape(1, h_dim)
    return tw, ph, wt, b2


def odefunc_node(s, z, ts, t0, params, *, start_time: float, end_time: float,
                 tm: int = 1024):
    """Fused ODEFunc_node forward.

    s: scalar; z: (N, z_dim) (f32 or bf16); ts, t0: (N, 1);
    params: output of prepare_odefunc_node_params (call once per solve).
    Returns (dz, ts, t0) with dz: (N, h_dim) in z.dtype.
    """
    tw, ph, wt, b2 = params
    n, z_dim = z.shape
    h_dim = wt.shape[1]
    f32 = jnp.float32

    # Pack [ts | t_0] into one lane-resident (N, 2) stream: one DMA per step.
    tst0 = jnp.concatenate(
        [jnp.asarray(ts, f32).reshape(n, 1), jnp.asarray(t0, f32).reshape(n, 1)],
        axis=1)

    # Pad rows only up to a multiple of 8 (sublane requirement), and only if needed.
    n8 = _round_up(max(n, 8), 8)
    if n8 != n:
        z_in = jnp.zeros((n8, z_dim), z.dtype).at[:n].set(z)
        tst0_in = jnp.zeros((n8, 2), f32).at[:n].set(tst0)
    else:
        z_in, tst0_in = z, tst0

    # Row tile: large for low per-step overhead, but clamped so the grid has >=2
    # steps whenever possible (keeps both v7x TensorCores busy).
    tm = max(8, min(int(tm), _round_up(-(-n8 // 2), 8)))
    grid = (pl.cdiv(n8, tm),)

    s_arr = jnp.asarray(s, f32).reshape(1)

    kernel = functools.partial(
        _odefunc_node_kernel,
        start_time=float(start_time),
        inv_span=1.0 / (float(end_time) - float(start_time)),  # inf if equal (as torch)
    )

    dz = pl.pallas_call(
        kernel,
        out_shape=jax.ShapeDtypeStruct((n8, h_dim), z.dtype),
        grid=grid,
        in_specs=[
            pl.BlockSpec(memory_space=pltpu.MemorySpace.SMEM),   # s (scalar)
            pl.BlockSpec((tm, 2), lambda i: (i, 0)),             # [ts | t_0] row-tiled
            pl.BlockSpec((tm, z_dim), lambda i: (i, 0)),         # z          row-tiled
            pl.BlockSpec((1, z_dim), lambda i: (0, 0)),          # time freq  replicated
            pl.BlockSpec((1, z_dim), lambda i: (0, 0)),          # time phase replicated
            pl.BlockSpec((z_dim, h_dim), lambda i: (0, 0)),      # W.T        replicated
            pl.BlockSpec((1, h_dim), lambda i: (0, 0)),          # bias       replicated
        ],
        out_specs=pl.BlockSpec((tm, h_dim), lambda i: (i, 0)),
        compiler_params=pltpu.CompilerParams(
            dimension_semantics=("parallel",)),
    )(s_arr, tst0_in, z_in, tw, ph, wt, b2)

    if n8 != n:
        dz = dz[:n]
    # ts and t_0 pass through unchanged, matching the PyTorch return tuple.
    return dz, ts, t0


def _reference(s, z, ts, t0, time_w, time_phase, w, b, start_time, end_time):
    ratio = (ts - t0) / (end_time - start_time)
    t = (s - start_time) * ratio + t0
    t_enc = jnp.cos(t * time_w + time_phase)
    dz = jnp.tanh((z.astype(jnp.float32) + t_enc) @ w.T + b)
    return dz * ratio


if __name__ == "__main__":
    # Small shapes consistent with the module: per-sample latent z, timestamps ts/t_0.
    N, z_dim, h_dim = 64, 32, 48
    start_time, end_time = 0.0, 1.0

    key = jax.random.PRNGKey(0)
    kz, kts, kt0, kfw, kph, kw, kb = jax.random.split(key, 7)

    z = jax.random.normal(kz, (N, z_dim), dtype=jnp.float32)
    ts = jax.random.uniform(kts, (N, 1), dtype=jnp.float32, minval=0.2, maxval=1.0)
    t0 = ts * jax.random.uniform(kt0, (N, 1), dtype=jnp.float32, minval=0.0, maxval=0.8)

    # Sinusoidal TimeEncode params (t_dim == z_dim so z + time_enc(t) is well-formed).
    time_w = jax.random.normal(kfw, (1, z_dim), dtype=jnp.float32)
    time_phase = 0.1 * jax.random.normal(kph, (1, z_dim), dtype=jnp.float32)

    # nn.Linear(z_dim, h_dim): weight (h_dim, z_dim), bias (h_dim,).
    w = 0.1 * jax.random.normal(kw, (h_dim, z_dim), dtype=jnp.float32)
    b = 0.1 * jax.random.normal(kb, (h_dim,), dtype=jnp.float32)

    # One-time parameter prep, shared across all ODE-func evaluations of a solve.
    params = prepare_odefunc_node_params(time_w, time_phase, w, b)

    fwd = jax.jit(functools.partial(odefunc_node,
                                    start_time=start_time, end_time=end_time))

    # The ODE func is called many times per solve; simulate a couple of evals.
    for s_val in (0.37, 0.63):
        s = jnp.float32(s_val)
        dz, ts_out, t0_out = fwd(s, z, ts, t0, params)
        dz = jax.block_until_ready(dz)
        dz_ref = _reference(s, z, ts, t0, time_w, time_phase, w, b,
                            start_time, end_time)
        assert dz.shape == (N, h_dim)
        assert jnp.allclose(dz, dz_ref, atol=1e-4, rtol=1e-4), "f32 mismatch vs reference"
        assert jnp.allclose(ts_out, ts) and jnp.allclose(t0_out, t0)

    # bf16 hot streams (z and W): halves the dominant HBM bytes; looser tolerance.
    params_bf16 = prepare_odefunc_node_params(time_w, time_phase, w, b,
                                              param_dtype=jnp.bfloat16)
    s = jnp.float32(0.37)
    dz_bf16, _, _ = fwd(s, z.astype(jnp.bfloat16), ts, t0, params_bf16)
    dz_bf16 = jax.block_until_ready(dz_bf16)
    dz_ref = _reference(s, z, ts, t0, time_w, time_phase, w, b, start_time, end_time)
    assert dz_bf16.dtype == jnp.bfloat16
    assert jnp.allclose(dz_bf16.astype(jnp.float32), dz_ref,
                        atol=5e-2, rtol=5e-2), "bf16 mismatch vs reference"

    print("KERNEL_OK")
</pallas_src>

<mosaic_0001>
module attributes {stable_mosaic.version = 11 : i64} {
  func.func @_odefunc_node_kernel(%arg0: i32, %arg1: memref<1xf32, #tpu.memory_space<smem>>, %arg2: memref<32x2xf32, #tpu.memory_space<vmem>>, %arg3: memref<32x32xf32, #tpu.memory_space<vmem>>, %arg4: memref<1x32xf32, #tpu.memory_space<vmem>>, %arg5: memref<1x32xf32, #tpu.memory_space<vmem>>, %arg6: memref<32x48xf32, #tpu.memory_space<vmem>>, %arg7: memref<1x48xf32, #tpu.memory_space<vmem>>, %arg8: memref<32x48xf32, #tpu.memory_space<vmem>>) attributes {dimension_semantics = [#tpu.dimension_semantics<parallel>], iteration_bounds = array<i64: 2>, scalar_prefetch = 0 : i64, scratch_operands = 0 : i64, tpu.core_type = #tpu.core_type<tc>, window_params = [{transform_indices = @transform_0, window_bounds = array<i64: 1>}, {transform_indices = @transform_1, window_bounds = array<i64: 32, 2>}, {transform_indices = @transform_2, window_bounds = array<i64: 32, 32>}, {pipeline_mode = #tpu.pipeline_mode<synchronous>, transform_indices = @transform_3, window_bounds = array<i64: 1, 32>}, {pipeline_mode = #tpu.pipeline_mode<synchronous>, transform_indices = @transform_4, window_bounds = array<i64: 1, 32>}, {pipeline_mode = #tpu.pipeline_mode<synchronous>, transform_indices = @transform_5, window_bounds = array<i64: 32, 48>}, {pipeline_mode = #tpu.pipeline_mode<synchronous>, transform_indices = @transform_6, window_bounds = array<i64: 1, 48>}, {transform_indices = @transform_7, window_bounds = array<i64: 32, 48>}]} {
    %c0 = arith.constant 0 : index
    %0 = memref.load %arg1[%c0] : memref<1xf32, #tpu.memory_space<smem>>
    %c0_0 = arith.constant 0 : index
    %c0_1 = arith.constant 0 : index
    %1 = vector.load %arg2[%c0_0, %c0_1] : memref<32x2xf32, #tpu.memory_space<vmem>>, vector<32x2xf32>
    %2 = vector.extract_strided_slice %1 {offsets = [0, 0], sizes = [32, 1], strides = [1, 1]} : vector<32x2xf32> to vector<32x1xf32>
    %3 = vector.extract_strided_slice %1 {offsets = [0, 1], sizes = [32, 1], strides = [1, 1]} : vector<32x2xf32> to vector<32x1xf32>
    %4 = arith.subf %2, %3 : vector<32x1xf32>
    %cst = arith.constant 1.000000e+00 : f32
    %5 = vector.broadcast %cst : f32 to vector<32x1xf32>
    %6 = arith.mulf %4, %5 : vector<32x1xf32>
    %cst_2 = arith.constant 0.000000e+00 : f32
    %7 = arith.subf %0, %cst_2 : f32
    %8 = vector.broadcast %7 : f32 to vector<32x1xf32>
    %9 = arith.mulf %8, %6 : vector<32x1xf32>
    %10 = arith.addf %9, %3 : vector<32x1xf32>
    %c0_3 = arith.constant 0 : index
    %c0_4 = arith.constant 0 : index
    %11 = vector.load %arg4[%c0_3, %c0_4] : memref<1x32xf32, #tpu.memory_space<vmem>>, vector<1x32xf32>
    %12 = vector.broadcast %10 : vector<32x1xf32> to vector<32x32xf32>
    %13 = vector.broadcast %11 : vector<1x32xf32> to vector<32x32xf32>
    %14 = arith.mulf %12, %13 : vector<32x32xf32>
    %c0_5 = arith.constant 0 : index
    %c0_6 = arith.constant 0 : index
    %15 = vector.load %arg5[%c0_5, %c0_6] : memref<1x32xf32, #tpu.memory_space<vmem>>, vector<1x32xf32>
    %16 = vector.broadcast %15 : vector<1x32xf32> to vector<32x32xf32>
    %17 = arith.addf %14, %16 : vector<32x32xf32>
    %18 = math.cos %17 : vector<32x32xf32>
    %c0_7 = arith.constant 0 : index
    %c0_8 = arith.constant 0 : index
    %19 = vector.load %arg3[%c0_7, %c0_8] : memref<32x32xf32, #tpu.memory_space<vmem>>, vector<32x32xf32>
    %20 = arith.addf %19, %18 : vector<32x32xf32>
    %c0_9 = arith.constant 0 : index
    %c0_10 = arith.constant 0 : index
    %21 = vector.load %arg6[%c0_9, %c0_10] : memref<32x48xf32, #tpu.memory_space<vmem>>, vector<32x48xf32>
    %cst_11 = arith.constant dense<0.000000e+00> : vector<32x48xf32>
    %22 = tpu.matmul %20, %21, %cst_11 {dimension_numbers = #tpu.dot_dimension_numbers<[1], [0], [0], [1], [0, 0, 1, 1], [], []>} : vector<32x32xf32>, vector<32x48xf32>, vector<32x48xf32> -> vector<32x48xf32>
    %c0_12 = arith.constant 0 : index
    %c0_13 = arith.constant 0 : index
    %23 = vector.load %arg7[%c0_12, %c0_13] : memref<1x48xf32, #tpu.memory_space<vmem>>, vector<1x48xf32>
    %24 = vector.broadcast %23 : vector<1x48xf32> to vector<32x48xf32>
    %25 = arith.addf %22, %24 : vector<32x48xf32>
    %26 = math.tanh %25 : vector<32x48xf32>
    %27 = vector.broadcast %6 : vector<32x1xf32> to vector<32x48xf32>
    %28 = arith.mulf %26, %27 : vector<32x48xf32>
    %c0_14 = arith.constant 0 : index
    %c0_15 = arith.constant 0 : index
    %29 = vector.load %arg8[%c0_14, %c0_15] : memref<32x48xf32, #tpu.memory_space<vmem>>, vector<32x48xf32>
    tpu.vector_store %arg8[%c0_14, %c0_15], %28 {strides = array<i32>} : memref<32x48xf32, #tpu.memory_space<vmem>>, vector<32x48xf32>,
    return
  }
  func.func @transform_0(%arg0: i32) -> i32 {
    %c0_i32 = arith.constant 0 : i32
    %c0_i32_0 = arith.constant 0 : i32
    return %c0_i32 : i32
  }
  func.func @transform_1(%arg0: i32) -> (i32, i32) {
    %c0_i32 = arith.constant 0 : i32
    %c0_i32_0 = arith.constant 0 : i32
    return %arg0, %c0_i32 : i32, i32
  }
  func.func @transform_2(%arg0: i32) -> (i32, i32) {
    %c0_i32 = arith.constant 0 : i32
    %c0_i32_0 = arith.constant 0 : i32
    return %arg0, %c0_i32 : i32, i32
  }
  func.func @transform_3(%arg0: i32) -> (i32, i32) {
    %c0_i32 = arith.constant 0 : i32
    %c0_i32_0 = arith.constant 0 : i32
    %c0_i32_1 = arith.constant 0 : i32
    return %c0_i32, %c0_i32_0 : i32, i32
  }
  func.func @transform_4(%arg0: i32) -> (i32, i32) {
    %c0_i32 = arith.constant 0 : i32
    %c0_i32_0 = arith.constant 0 : i32
    %c0_i32_1 = arith.constant 0 : i32
    return %c0_i32, %c0_i32_0 : i32, i32
  }
  func.func @transform_5(%arg0: i32) -> (i32, i32) {
    %c0_i32 = arith.constant 0 : i32
    %c0_i32_0 = arith.constant 0 : i32
    %c0_i32_1 = arith.constant 0 : i32
    return %c0_i32, %c0_i32_0 : i32, i32
  }
  func.func @transform_6(%arg0: i32) -> (i32, i32) {
    %c0_i32 = arith.constant 0 : i32
    %c0_i32_0 = arith.constant 0 : i32
    %c0_i32_1 = arith.constant 0 : i32
    return %c0_i32, %c0_i32_0 : i32, i32
  }
  func.func @transform_7(%arg0: i32) -> (i32, i32) {
    %c0_i32 = arith.constant 0 : i32
    %c0_i32_0 = arith.constant 0 : i32
    return %arg0, %c0_i32 : i32, i32
  }
}

</mosaic_0001>

<bundles_post_ra>
// kernel: odefunc_node.1
= control target key start
LH: loop header
LB: loop body
LE: loop exit
PB: predicated region body
PF: predicated region fallthrough
CT: control target
= control target key end

     0   :  { %s1194_s26 = smov 0   ;;  %s1527_s0 = inlined_call_operand.<no memory space> [shape: f32[1], index: 0, kind: input, shape index: {}]   ;;  %s1528_s1 = inlined_call_operand.vmem [shape: f32[64,2], index: 1, kind: input, shape index: {}]   ;;  %s1529_s2 = inlined_call_operand.vmem [shape: f32[64,32], index: 2, kind: input, shape index: {}]   ;;  %s1530_s3 = inlined_call_operand.vmem [shape: f32[1,32], index: 3, kind: input, shape index: {}]   ;;  %s1531_s4 = inlined_call_operand.vmem [shape: f32[1,32], index: 4, kind: input, shape index: {}]   ;;  %s1532_s5 = inlined_call_operand.vmem [shape: f32[32,48], index: 5, kind: input, shape index: {}]   ;;  %s1533_s6 = inlined_call_operand.vmem [shape: f32[1,48], index: 6, kind: input, shape index: {}]   ;;  %s1534_s7 = inlined_call_operand.vmem [shape: f32[64,48], index: 7, kind: output, shape index: {}]  }
   0x1   :  { %12 = sst [smem:[#allocation2]] %s1527_s0 }
   0x2 LB: > { %s1011_s27 = sadd.s32 4294967295, %s1141_s26   ;;  %p1015_p0 = scmp.ge.s32.totalorder %s1141_s26, 1  ;;  %s1141_s26 = sphi %s1194_s26, %s18_s26  }
   0x3   : > { %p250_p1 = scmp.lt.s32.totalorder %s1141_s26, 3 }
   0x5   : > { %p251_p2 = pnand %p1015_p0, %p250_p1 }
   0x6   : > { %s1016_s28 = sshll.u32 (!%p251_p2), %s1011_s27, 2  ;;  %s1144_s9 = smov (!%p251_p2), 127  }
   0x7   : > { %254 = sbr.rel (%p251_p2) target bundleno = 611 (0x263), region = 48  ;;  %p288_p3 = scmp.lt.s32.totalorder (!%p251_p2), %s1016_s28, 7 }
   0x8   : > { %s305_s10 = sld [smem:[#allocation2]] (!%p251_p2) }
   0xc   : > { %v1143_v0 = vmov 0   ;;  %s1542_s28 = smov (!%p288_p3, %s1016_s28), 7  ;;  %v804_v22 = vld [vmem:[%s1532_s5 + $0x18] sm:$0xff]  ;;  %v803_v23 = vld [vmem:[%s1532_s5 + $0x10] sm:$0xff]  ;;  %v802_v24 = vld [vmem:[%s1532_s5 + $0x8] sm:$0xff] }
   0xd   : > { %1109 = vset.pattern.permute.xlu0 %v1143_v0  ;;  %1110 = vset.pattern.permute.xlu1 %v1143_v0  ;;  %s1202_s0 = sshll.u32 %s1542_s28, 3  ;;  %v801_v25 = vld [vmem:[%s1532_s5] sm:$0xff] }
   0xe   : > { %s291_s8 = scalar_lea.vmem %s1528_s1, %s1202_s0  ;;  %v330_v5 = vstv %s305_s10  ;;  %1055 = vmatprep.subr.mxu0 %v804_v22  ;;  %1069 = vmatprep.subr.mxu1 %v804_v22  ;;  %v1022_v26 = vld [vmem:[%s1530_s3] ss:$0 sm:$0xff]  ;;  %s1487_s25 = scalar_lea.vmem %s1529_s2, %s1202_s0 }
   0xf   : > { %v308_v1 = vld [vmem:[%s291_s8 + $0x10] sm:$0xff]  ;;  %v306_v2 = vld [vmem:[%s291_s8] sm:$0xff]  ;;  %v309_v3 = vld [vmem:[%s291_s8 + $0x18] sm:$0xff]  ;;  %1056 = vmatpush3.msra.mxu0 %v804_v22  ;;  %1073 = vmatpush3.msra.mxu1 %v804_v22 }
  0x10   : > { %318 = vrot.lane.b32.xlu1 %v308_v1, %s1144_s9  ;;  %314 = vrot.lane.b32.xlu0 %v306_v2, %s1144_s9  ;;  %v307_v4 = vld [vmem:[%s291_s8 + $0x8] sm:$0xff]  ;;  %v1023_v27 = vld [vmem:[%s1531_s4] ss:$0 sm:$0xff]  ;;  %s303_s8 = scalar_lea.vmem %s1534_s7, %s1202_s0 }
  0x11   : > { %1057 = vmatprep.subr.mxu0 %v803_v23  ;;  %1070 = vmatprep.subr.mxu1 %v803_v23 }
  0x12   : > { %1058 = vmatpush3.msra.mxu0 %v803_v23  ;;  %1074 = vmatpush3.msra.mxu1 %v803_v23 }
  0x13   : > { %1059 = vmatprep.subr.mxu0 %v802_v24  ;;  %1071 = vmatprep.subr.mxu1 %v802_v24 }
  0x14   : > { %320 = vrot.lane.b32.xlu1 %v309_v3, %s1144_s9  ;;  %316 = vrot.lane.b32.xlu0 %v307_v4, %s1144_s9 }
  0x15   : > { %1060 = vmatpush3.msra.mxu0 %v802_v24  ;;  %1075 = vmatpush3.msra.mxu1 %v802_v24  ;;  %v1150_v24 = vmov 1326507024  }
  0x16   : > { %1061 = vmatprep.subr.mxu0 %v801_v25  ;;  %1072 = vmatprep.subr.mxu1 %v801_v25 }
  0x17   : > { %1062 = vmatpush3.msra.mxu0 %v801_v25  ;;  %1076 = vmatpush3.msra.mxu1 %v801_v25 }
  0x82   : > { %v319_v6 = vpop.permute.xlu1 %318  ;;  %v315_v7 = vpop.permute.xlu0 %314 }
  0x83   : > { %v326_v8 = vsub.f32 %v306_v2, %v315_v7  ;;  %v328_v12 = vsub.f32 %v308_v1, %v319_v6 }
  0x85   : > { %v331_v9 = vmul.f32 %v330_v5, %v326_v8  ;;  %v333_v18 = vmul.f32 %v330_v5, %v328_v12 }
  0x86   : > { %v321_v10 = vpop.permute.xlu1 %320  ;;  %v317_v11 = vpop.permute.xlu0 %316 }
  0x87   : > { %v335_v13 = vadd.f32 %v331_v9, %v315_v7  ;;  %v329_v14 = vsub.f32 %v309_v3, %v321_v10  ;;  %v327_v15 = vsub.f32 %v307_v4, %v317_v11  ;;  %v337_v21 = vadd.f32 %v333_v18, %v319_v6 }
  0x89   : > { %v334_v16 = vmul.f32 %v330_v5, %v329_v14  ;;  %v332_v17 = vmul.f32 %v330_v5, %v327_v15  ;;  %342 = vperm.xlu0 %1109, %v335_v13  }
  0x8b   : > { %v338_v19 = vadd.f32 %v334_v16, %v321_v10  ;;  %v336_v20 = vadd.f32 %v332_v17, %v317_v11  ;;  %v1146_v10 = vmov 683565275   ;;  %v1148_v16 = vmov 2131351028  }
  0x8d   : > { %357 = vperm.xlu0 %1109, %v338_v19   ;;  %347 = vperm.xlu1 %1110, %v336_v20   ;;  %v1149_v19 = vmov 2102212464  }
  0x91   : > { %921 = vperm.xlu0 %1109, %v327_v15   ;;  %352 = vperm.xlu1 %1110, %v337_v21  }
  0x95   : > { %931 = vperm.xlu0 %1109, %v329_v14   ;;  %916 = vperm.xlu1 %1110, %v326_v8   ;;  %v1145_v8 = vmov 920167782  }
  0x99   : > { %926 = vperm.xlu1 %1110, %v328_v12   ;;  %v1147_v12 = vmov 2475754826  }
 0x104   : > { %v343_v28 = vpop.permute.xlu0 %342 }
 0x105   : > { %v366_v29 = vmul.f32 %v1022_v26, %v343_v28 }
 0x107   : > { %v1226_v30 = vadd.f32 %v1023_v27, %v366_v29 }
 0x108   : > { %v348_v31 = vpop.permute.xlu1 %347  ;;  %v358_v32 = vpop.permute.xlu0 %357 }
 0x109   : > { %v384_v33 = vand.u32 2139095040, %v1226_v30  ;;  %v367_v34 = vmul.f32 %v1022_v26, %v348_v31  ;;  %v369_v35 = vmul.f32 %v1022_v26, %v358_v32  ;;  %v381_v3 = vand.u32 2147483647, %v1226_v30 }
 0x10b   : > { %v385_v36 = vshrl.u32 %v384_v33, 23  ;;  %v1229_v37 = vadd.f32 %v1023_v27, %v367_v34  ;;  %v1231_v38 = vadd.f32 %v1023_v27, %v369_v35 }
 0x10c   : > { %v353_v39 = vpop.permute.xlu1 %352 }
 0x10d   : > { %v1024_v40 = vadd.s32 4294967169, %v385_v36  ;;  %v484_v41 = vand.u32 2147483647, %v1229_v37  ;;  %v487_v42 = vand.u32 2139095040, %v1229_v37  ;;  %v690_v43 = vand.u32 2147483647, %v1231_v38 }
 0x10e   : > { %v693_v44 = vand.u32 2139095040, %v1231_v38  ;;  %v368_v45 = vmul.f32 %v1022_v26, %v353_v39 }
 0x10f   : > { %v391_v46 = vadd.s32 1, %v1024_v40  ;;  %v488_v47 = vshrl.u32 %v487_v42, 23  ;;  %v491_v50 = vand.u32 8388607, %v484_v41  ;;  %v697_v53 = vand.u32 8388607, %v690_v43 }
 0x110   : > { %v694_v48 = vshrl.u32 %v693_v44, 23  ;;  %v1241_v54 = vadd.f32 %v1023_v27, %v368_v45 }
 0x111   : > { %vm392_vm0 = vcmp.gt.s32.totalorder %v391_v46, 0  ;;  %v1028_v49 = vadd.s32 4294967169, %v488_v47  ;;  %v492_v58 = vor.u32 8388608, %v491_v50  ;;  %v698_v59 = vor.u32 8388608, %v697_v53 }
 0x112   : > { %v393_v51 = vsel %vm392_vm0, %v391_v46, 0  ;;  %v1036_v52 = vadd.s32 4294967169, %v694_v48  ;;  %v590_v60 = vand.u32 2139095040, %v1241_v54 }
 0x113   : > { %v1243_v55 = vand.u32 31, %v393_v51  ;;  %v494_v56 = vadd.s32 1, %v1028_v49  ;;  %v1249_v1 = vshrl.u32 %v393_v51, 5  ;;  %v1251_v2 = vshll.u32 %v492_v58, 8 }
 0x114   : > { %v700_v57 = vadd.s32 1, %v1036_v52  ;;  %v1254_v6 = vshll.u32 %v698_v59, 8  ;;  %v1256_v7 = vshrl.u32 %v590_v60, 23 }
 0x115   : > { %vm495_vm1 = vcmp.gt.s32.totalorder %v494_v56, 0  ;;  %v1247_v61 = vsub.s32 32, %v1243_v55  ;;  %vm416_vm12 = vcmp.lt.s32.totalorder %v1249_v1, 4  ;;  %vm413_vm14 = vcmp.lt.s32.totalorder %v1249_v1, 1 }
 0x116   : > { %vm701_vm2 = vcmp.gt.s32.totalorder %v700_v57, 0  ;;  %v496_v62 = vsel %vm495_vm1, %v494_v56, 0  ;;  %vm414_vm0 = vcmp.lt.s32.totalorder %v1249_v1, 2  ;;  %vm415_vm1 = vcmp.lt.s32.totalorder %v1249_v1, 3 }
 0x117   : > { %v498_v63 = vand.u32 31, %v496_v62  ;;  %v702_v0 = vsel %vm701_vm2, %v700_v57, 0  ;;  %v497_v4 = vshrl.u32 %v496_v62, 5  ;;  %v1260_v9 = vshrl.u32 %v1145_v8, %v1247_v61 }
 0x118   : > { %v704_v14 = vand.u32 31, %v702_v0  ;;  %v703_v58 = vshrl.u32 %v702_v0, 5 }
 0x119   : > { %v499_v5 = vsub.s32 32, %v498_v63  ;;  %v501_v11 = vshll.u32 %v1146_v10, %v498_v63  ;;  %v504_v13 = vshll.u32 %v1147_v12, %v498_v63  ;;  %v507_v18 = vshll.u32 %v1148_v16, %v498_v63 }
 0x11a   : > { %v510_v21 = vshll.u32 %v1149_v19, %v498_v63  ;;  %v513_v23 = vshll.u32 %v1145_v8, %v498_v63  ;;  %vm516_vm3 = vcmp.lt.s32.totalorder %v497_v4, 1  ;;  %vm519_vm4 = vcmp.lt.s32.totalorder %v497_v4, 4 }
 0x11b   : > { %v502_v15 = vshrl.u32 %v1147_v12, %v499_v5  ;;  %v505_v17 = vshrl.u32 %v1148_v16, %v499_v5  ;;  %v508_v20 = vshrl.u32 %v1149_v19, %v499_v5  ;;  %v511_v22 = vshrl.u32 %v1145_v8, %v499_v5 }
 0x11c   : > { %v514_v25 = vshrl.u32 %v1150_v24, %v499_v5  ;;  %v705_v32 = vsub.s32 32, %v704_v14  ;;  %v500_v33 = vshrl.u32 %v1146_v10, %v499_v5  ;;  %vm517_vm5 = vcmp.lt.s32.totalorder %v497_v4, 2 }
 0x11d   : > { %v503_v26 = vor.u32 %v502_v15, %v501_v11  ;;  %v506_v27 = vor.u32 %v505_v17, %v504_v13  ;;  %v509_v28 = vor.u32 %v508_v20, %v507_v18  ;;  %v512_v29 = vor.u32 %v511_v22, %v510_v21 }
 0x11e   : > { %v515_v31 = vor.u32 %v514_v25, %v513_v23  ;;  %vm518_vm6 = vcmp.lt.s32.totalorder %v497_v4, 3  ;;  %v707_v49 = vshll.u32 %v1146_v10, %v704_v14  ;;  %v708_v50 = vshrl.u32 %v1147_v12, %v705_v32 }
 0x11f   : > { %v521_v34 = vsel %vm519_vm4, %v509_v28, 2102212464  ;;  %v524_v35 = vsel %vm516_vm3, %v503_v26, %v506_v27  ;;  %v528_v36 = vsel %vm516_vm3, %v506_v27, %v509_v28  ;;  %v525_v39 = vsel %vm519_vm4, %v512_v29, 920167782 }
 0x120   : > { %v529_v40 = vsel %vm519_vm4, %v515_v31, 1326507024  ;;  %v520_v42 = vsel %vm516_vm3, %v500_v33, %v503_v26  ;;  %v522_v44 = vsel %vm518_vm6, %v506_v27, %v521_v34  ;;  %v526_v45 = vsel %vm518_vm6, %v509_v28, %v525_v39 }
 0x121   : > { %v530_v46 = vsel %vm518_vm6, %v512_v29, %v529_v40  ;;  %v527_v47 = vsel %vm517_vm5, %v524_v35, %v526_v45  ;;  %v523_v57 = vsel %vm517_vm5, %v520_v42, %v522_v44  ;;  %v710_v59 = vshll.u32 %v1147_v12, %v704_v14 }
 0x122   : > { %v531_v48 = vsel %vm517_vm5, %v528_v36, %v530_v46  ;;  %v1280_v53 = vmul.u32.u64.low %v1251_v2, %v527_v47  ;;  %v1281_v56 = vmul.u32.u64.high %v1251_v2, %v527_v47, %v1280_v53  ;;  %v711_v60 = vshrl.u32 %v1148_v16, %v705_v32 }
 0x123   : > { %v1276_v51 = vmul.u32.u64.low %v1251_v2, %v531_v48  ;;  %v1277_v52 = vmul.u32.u64.high %v1251_v2, %v531_v48, %v1276_v51  ;;  %v709_v62 = vor.u32 %v708_v50, %v707_v49  ;;  %v713_v63 = vshll.u32 %v1148_v16, %v704_v14 }
 0x124   : > { %v714_v4 = vshrl.u32 %v1149_v19, %v705_v32  ;;  %v717_v5 = vshrl.u32 %v1145_v8, %v705_v32  ;;  %v712_v11 = vor.u32 %v711_v60, %v710_v59  ;;  %v716_v13 = vshll.u32 %v1149_v19, %v704_v14 }
 0x125   : > { %v719_v15 = vshll.u32 %v1145_v8, %v704_v14  ;;  %v720_v17 = vshrl.u32 %v1150_v24, %v705_v32  ;;  %v539_v0 = vmul.u32 %v1251_v2, %v523_v57  ;;  %vm541_vm7 = vc.u32 %v1277_v52, %v1280_v53 }
 0x126   : > { %v542_v18 = vadd.s32 1, %v1281_v56  ;;  %v715_v20 = vor.u32 %v714_v4, %v713_v63  ;;  %v718_v21 = vor.u32 %v717_v5, %v716_v13  ;;  %vm722_vm8 = vcmp.lt.s32.totalorder %v703_v58, 1 }
 0x127   : > { %v721_v22 = vor.u32 %v720_v17, %v719_v15  ;;  %vm725_vm9 = vcmp.lt.s32.totalorder %v703_v58, 4  ;;  %v706_v25 = vshrl.u32 %v1146_v10, %v705_v32  ;;  %v730_v14 = vsel %vm722_vm8, %v709_v62, %v712_v11 }
 0x128   : > { %v543_v23 = vsel %vm541_vm7, %v542_v18, %v1281_v56  ;;  %v727_v26 = vsel %vm725_vm9, %v715_v20, 2102212464  ;;  %vm724_vm10 = vcmp.lt.s32.totalorder %v703_v58, 3  ;;  %v731_v28 = vsel %vm725_vm9, %v718_v21, 920167782 }
 0x129   : > { %v544_v27 = vadd.s32 %v543_v23, %v539_v0  ;;  %v734_v2 = vsel %vm722_vm8, %v712_v11, %v715_v20  ;;  %vm723_vm11 = vcmp.lt.s32.totalorder %v703_v58, 2  ;;  %v726_v29 = vsel %vm722_vm8, %v706_v25, %v709_v62 }
 0x12a   : > { %v732_v31 = vsel %vm724_vm10, %v715_v20, %v731_v28  ;;  %v735_v33 = vsel %vm725_vm9, %v721_v22, 1326507024  ;;  %v728_v35 = vsel %vm724_vm10, %v712_v11, %v727_v26  ;;  %v411_v40 = vshrl.u32 %v1150_v24, %v1247_v61 }
 0x12b   : > { %v545_v34 = vadd.s32 536870912, %v544_v27  ;;  %v733_v36 = vsel %vm723_vm11, %v730_v14, %v732_v31  ;;  %v736_v39 = vsel %vm724_vm10, %v718_v21, %v735_v33  ;;  %v407_v45 = vshll.u32 %v1149_v19, %v1243_v55 }
 0x12c   : > { %v737_v42 = vsel %vm723_vm11, %v734_v2, %v736_v39  ;;  %v1301_v32 = vmul.u32.u64.low %v1254_v6, %v733_v36  ;;  %v1302_v44 = vmul.u32.u64.high %v1254_v6, %v733_v36, %v1301_v32  ;;  %v410_v49 = vshll.u32 %v1145_v8, %v1243_v55 }
 0x12d   : > { %v1307_v46 = vshrl.u32 %v545_v34, 30  ;;  %v1310_v47 = vmul.u32.u64.low %v1254_v6, %v737_v42  ;;  %v1311_v48 = vmul.u32.u64.high %v1254_v6, %v737_v42, %v1310_v47  ;;  %v729_v50 = vsel %vm723_vm11, %v726_v29, %v728_v35 }
 0x12e   : > { %v1032_v51 = vadd.s32 4294967169, %v1256_v7  ;;  %v399_v56 = vshrl.u32 %v1147_v12, %v1247_v61  ;;  %v388_v58 = vand.u32 8388607, %v381_v3  ;;  %v402_v59 = vshrl.u32 %v1148_v16, %v1247_v61 }
 0x12f   : > { %v547_v57 = vshll.u32 %v1307_v46, 30  ;;  %v409_v60 = vor.u32 %v1260_v9, %v407_v45  ;;  %v412_v62 = vor.u32 %v411_v40, %v410_v49  ;;  %v748_v63 = vadd.s32 1, %v1302_v44 }
 0x130   : > { %v398_v7 = vshll.u32 %v1146_v10, %v1243_v55  ;;  %v745_v5 = vmul.u32 %v1254_v6, %v729_v50  ;;  %vm747_vm13 = vc.u32 %v1311_v48, %v1301_v32  ;;  %v401_v11 = vshll.u32 %v1147_v12, %v1243_v55 }
 0x131   : > { %v1328_v4 = vsub.s32 %v544_v27, %v547_v57  ;;  %v749_v13 = vsel %vm747_vm13, %v748_v63, %v1302_v44  ;;  %v597_v15 = vadd.s32 1, %v1032_v51  ;;  %v404_v17 = vshll.u32 %v1148_v16, %v1243_v55 }
 0x132   : > { %v400_v9 = vor.u32 %v399_v56, %v398_v7  ;;  %v750_v18 = vadd.s32 %v749_v13, %v745_v5  ;;  %v403_v20 = vor.u32 %v402_v59, %v401_v11  ;;  %v405_v6 = vshrl.u32 %v1149_v19, %v1247_v61 }
 0x133   : > { %v550_v0 = vsub.s32 0, %v1328_v4  ;;  %v422_v21 = vsel %vm416_vm12, %v409_v60, 920167782  ;;  %v426_v22 = vsel %vm416_vm12, %v412_v62, 1326507024  ;;  %v389_v23 = vor.u32 8388608, %v388_v58 }
 0x134   : > { %v397_v25 = vshrl.u32 %v1146_v10, %v1247_v61  ;;  %v751_v55 = vadd.s32 536870912, %v750_v18  ;;  %v406_v14 = vor.u32 %v405_v6, %v404_v17  ;;  %vm598_vm15 = vcmp.gt.s32.totalorder %v597_v15, 0 }
 0x135   : > { %v1029_v26 = vmin.u32 %v550_v0, %v1328_v4  ;;  %v421_v27 = vsel %vm413_vm14, %v400_v9, %v403_v20  ;;  %v427_v34 = vsel %vm415_vm1, %v409_v60, %v426_v22  ;;  %v429_v35 = vshll.u32 %v389_v23, 8 }
 0x136   : > { %v1353_v2 = vshrl.u32 %v751_v55, 30  ;;  %v418_v61 = vsel %vm416_vm12, %v406_v14, 2102212464  ;;  %v423_v29 = vsel %vm415_vm1, %v406_v14, %v422_v21  ;;  %v425_v33 = vsel %vm413_vm14, %v403_v20, %v406_v14 }
 0x137   : > { %v552_v28 = vclz %v1029_v26  ;;  %v424_v31 = vsel %vm414_vm0, %v421_v27, %v423_v29  ;;  %v599_v40 = vsel %vm598_vm15, %v597_v15, 0  ;;  %v417_v42 = vsel %vm413_vm14, %v397_v25, %v400_v9 }
 0x138   : > { %v753_v39 = vshll.u32 %v1353_v2, 30  ;;  %v419_v44 = vsel %vm415_vm1, %v403_v20, %v418_v61  ;;  %v428_v45 = vsel %vm414_vm0, %v425_v33, %v427_v34  ;;  %v601_v56 = vand.u32 31, %v599_v40 }
 0x139   : > { %v1030_v36 = vadd.s32 4294967294, %v552_v28  ;;  %v1366_v47 = vmul.u32.u64.low %v429_v35, %v424_v31  ;;  %v1367_v49 = vmul.u32.u64.high %v429_v35, %v424_v31, %v1366_v47  ;;  %v420_v63 = vsel %vm414_vm0, %v417_v42, %v419_v44 }
 0x13a   : > { %v1370_v50 = vsub.s32 %v750_v18, %v753_v39  ;;  %v1372_v57 = vmul.u32.u64.low %v429_v35, %v428_v45  ;;  %v1373_v58 = vmul.u32.u64.high %v429_v35, %v428_v45, %v1372_v57  ;;  %v540_v5 = vadd.s32 %v1280_v53, %v1277_v52 }
 0x13b   : > { %vm1031_vm2 = vcmp.lt.s32.totalorder %v1030_v36, 0  ;;  %v439_v7 = vadd.s32 1, %v1367_v49  ;;  %v602_v15 = vsub.s32 32, %v601_v56  ;;  %v436_v9 = vmul.u32 %v429_v35, %v420_v63 }
 0x13c   : > { %v555_v51 = vsel %vm1031_vm2, 0, %v1030_v36  ;;  %v756_v62 = vsub.s32 0, %v1370_v50  ;;  %vm438_vm3 = vc.u32 %v1373_v58, %v1366_v47  ;;  %v587_v23 = vand.u32 2147483647, %v1241_v54 }
 0x13d   : > { %v556_v59 = vsub.s32 32, %v555_v51  ;;  %v560_v60 = vsub.s32 4294967266, %v555_v51  ;;  %v440_v18 = vsel %vm438_vm3, %v439_v7, %v1367_v49  ;;  %v557_v1 = vshll.u32 %v1328_v4, %v555_v51 }
 0x13e   : > { %v1037_v13 = vmin.u32 %v756_v62, %v1370_v50  ;;  %v441_v20 = vadd.s32 %v440_v18, %v436_v9  ;;  %v614_v22 = vshrl.u32 %v1145_v8, %v602_v15  ;;  %v600_v25 = vshrl.u32 %v599_v40, 5 }
 0x13f   : > { %v561_v11 = vadd.s32 127, %v560_v60  ;;  %v558_v17 = vshrl.u32 %v540_v5, %v556_v59  ;;  %v613_v26 = vshll.u32 %v1149_v19, %v601_v56  ;;  %v617_v55 = vshrl.u32 %v1150_v24, %v602_v15 }
 0x140   : > { %v758_v21 = vclz %v1037_v13  ;;  %v442_v52 = vadd.s32 536870912, %v441_v20  ;;  %v605_v61 = vshrl.u32 %v1147_v12, %v602_v15  ;;  %v608_v4 = vshrl.u32 %v1148_v16, %v602_v15 }
 0x141   : > { %v562_v0 = vshll.u32 %v561_v11, 23  ;;  %v559_v53 = vor.u32 %v558_v17, %v557_v1  ;;  %v615_v29 = vor.u32 %v614_v22, %v613_v26  ;;  %v616_v31 = vshll.u32 %v1145_v8, %v601_v56 }
 0x142   : > { %v1390_v14 = vshrl.u32 %v442_v52, 30  ;;  %v1038_v28 = vadd.s32 4294967294, %v758_v21  ;;  %v611_v34 = vshrl.u32 %v1149_v19, %v602_v15  ;;  %v594_v36 = vand.u32 8388607, %v587_v23 }
 0x143   : > { %v563_v6 = vor.u32 4788187, %v562_v0  ;;  %v566_v35 = vcvt.s32.f32 %v559_v53  ;;  %v604_v24 = vshll.u32 %v1146_v10, %v601_v56  ;;  %v607_v39 = vshll.u32 %v1147_v12, %v601_v56 }
 0x144   : > { %v444_v33 = vshll.u32 %v1390_v14, 30  ;;  %v618_v40 = vor.u32 %v617_v55, %v616_v31  ;;  %v610_v44 = vshll.u32 %v1148_v16, %v601_v56  ;;  %vm1039_vm4 = vcmp.lt.s32.totalorder %v1038_v28, 0 }
 0x145   : > { %v564_v27 = vand.u32 2147483647, %v563_v6  ;;  %v606_v49 = vor.u32 %v605_v61, %v604_v24  ;;  %v609_v8 = vor.u32 %v608_v4, %v607_v39  ;;  %vm622_vm5 = vcmp.lt.s32.totalorder %v600_v25, 4 }
 0x146   : > { %v445_v42 = vsub.s32 %v441_v20, %v444_v33  ;;  %v612_v57 = vor.u32 %v611_v34, %v610_v44  ;;  %v628_v19 = vsel %vm622_vm5, %v615_v29, 920167782  ;;  %v595_v59 = vor.u32 8388608, %v594_v36 }
 0x147   : > { %v567_v45 = vmul.f32 %v566_v35, %v564_v27  ;;  %v1402_v60 = vsel %vm1039_vm4, 0, %v1038_v28  ;;  %v632_v62 = vsel %vm622_vm5, %v618_v40, 1326507024  ;;  %vm619_vm6 = vcmp.lt.s32.totalorder %v600_v25, 1 }
 0x148   : > { %v447_v51 = vsub.s32 0, %v445_v42  ;;  %vm620_vm7 = vcmp.lt.s32.totalorder %v600_v25, 2  ;;  %vm621_vm8 = vcmp.lt.s32.totalorder %v600_v25, 3  ;;  %v627_v12 = vsel %vm619_vm6, %v606_v49, %v609_v8 }
 0x149   : > { %v568_v7 = vxor.u32 2147483648, %v567_v45  ;;  %v624_v56 = vsel %vm622_vm5, %v612_v57, 2102212464  ;;  %v629_v5 = vsel %vm621_vm8, %v612_v57, %v628_v19  ;;  %v631_v11 = vsel %vm619_vm6, %v609_v8, %v612_v57 }
 0x14a   : > { %v1025_v63 = vmin.u32 %v447_v51, %v445_v42  ;;  %v603_v13 = vshrl.u32 %v1146_v10, %v602_v15  ;;  %v630_v9 = vsel %vm620_vm7, %v627_v12, %v629_v5  ;;  %v633_v17 = vsel %vm621_vm8, %v615_v29, %v632_v62 }
 0x14b   : > { %v635_v0 = vshll.u32 %v595_v59, 8  ;;  %vm486_vm9 = vcmp.lt.s32.totalorder %v1229_v37, 0  ;;  %v766_v18 = vsub.s32 4294967266, %v1402_v60  ;;  %v634_v1 = vsel %vm620_vm7, %v631_v11, %v633_v17 }
 0x14c   : > { %v449_v16 = vclz %v1025_v63  ;;  %v623_v6 = vsel %vm619_vm6, %v603_v13, %v606_v49  ;;  %v625_v21 = vsel %vm621_vm8, %v609_v8, %v624_v56  ;;  %v569_v10 = vsel %vm486_vm9, %v568_v7, %v567_v45 }
 0x14d   : > { %v1412_v22 = vmul.u32.u64.low %v635_v0, %v634_v1  ;;  %v1413_v52 = vmul.u32.u64.high %v635_v0, %v634_v1, %v1412_v22  ;;  %v1417_v15 = vmul.u32.u64.low %v635_v0, %v630_v9  ;;  %v1418_v53 = vmul.u32.u64.high %v635_v0, %v630_v9, %v1417_v15 }
 0x14e   : > { %v1026_v20 = vadd.s32 4294967294, %v449_v16  ;;  %vm1423_vm11 = vcmp.le.f32.partialorder %v484_v41, 0.7853982  ;;  %v437_v27 = vadd.s32 %v1366_v47, %v1373_v58  ;;  %v626_v4 = vsel %vm620_vm7, %v623_v6, %v625_v21 }
 0x14f   : > { %v572_v29 = vsel %vm1423_vm11, %v1229_v37, %v569_v10  ;;  %v767_v31 = vadd.s32 127, %v766_v18  ;;  %vm644_vm12 = vc.u32 %v1413_v52, %v1417_v15  ;;  %v645_v35 = vadd.s32 1, %v1418_v53 }
 0x150   : > { %vm1027_vm10 = vcmp.lt.s32.totalorder %v1026_v20, 0  ;;  %v642_v36 = vmul.u32 %v635_v0, %v626_v4  ;;  %v762_v47 = vsub.s32 32, %v1402_v60  ;;  %1111 = vcosq.f32 %v572_v29 }
 0x151   : > { %v452_v55 = vsel %vm1027_vm10, 0, %v1026_v20  ;;  %v646_v25 = vsel %vm644_vm12, %v645_v35, %v1418_v53  ;;  %1113 = vsinq.f32 %v572_v29  ;;  %v746_v40 = vadd.s32 %v1301_v32, %v1311_v48 }
 0x152   : > { %v453_v28 = vsub.s32 32, %v452_v55  ;;  %v457_v61 = vsub.s32 4294967266, %v452_v55  ;;  %v454_v41 = vshll.u32 %v445_v42, %v452_v55  ;;  %v647_v39 = vadd.s32 %v646_v25, %v642_v36 }
 0x153   : > { %v768_v44 = vshll.u32 %v767_v31, 23  ;;  %v764_v49 = vshrl.u32 %v746_v40, %v762_v47  ;;  %v570_v19 = vsub.s32 4, %v1307_v46  ;;  %v763_v59 = vshll.u32 %v1370_v50, %v1402_v60 }
 0x154   : > { %v455_v33 = vshrl.u32 %v437_v27, %v453_v28  ;;  %v458_v34 = vadd.s32 127, %v457_v61  ;;  %v648_v42 = vadd.s32 536870912, %v647_v39  ;;  %vm383_vm13 = vcmp.lt.s32.totalorder %v1226_v30, 0 }
 0x155   : > { %v769_v62 = vor.u32 4788187, %v768_v44  ;;  %v765_v12 = vor.u32 %v764_v49, %v763_v59  ;;  %v571_v48 = vsel %vm486_vm9, %v570_v19, %v1307_v46  ;;  %vm1452_vm14 = vcmp.le.f32.partialorder %v381_v3, 0.7853982  ;;  %v793_v49 = vld [vmem:[%s1487_s25] sm:$0xff] }
 0x156   : > { %v456_v58 = vor.u32 %v455_v33, %v454_v41  ;;  %v459_v24 = vshll.u32 %v458_v34, 23  ;;  %v1440_v57 = vshrl.u32 %v648_v42, 30  ;;  %v467_v9 = vsub.s32 4, %v1390_v14 }
 0x157   : > { %v770_v56 = vand.u32 2147483647, %v769_v62  ;;  %v772_v13 = vcvt.s32.f32 %v765_v12  ;;  %v573_v46 = vsel %vm1423_vm11, 0, %v571_v48  ;;  %vm692_vm0 = vcmp.lt.s32.totalorder %v1231_v38, 0 }
 0x158   : > { %v460_v45 = vor.u32 4788187, %v459_v24  ;;  %v463_v51 = vcvt.s32.f32 %v456_v58  ;;  %v650_v7 = vshll.u32 %v1440_v57, 30  ;;  %v577_v1 = vand.u32 3, %v573_v46 }
 0x159   : > { %v773_v0 = vmul.f32 %v772_v13, %v770_v56  ;;  %v468_v6 = vsel %vm383_vm13, %v467_v9, %v1390_v14  ;;  %v643_v27 = vadd.s32 %v1417_v15, %v1413_v52  ;;  %vm1476_vm3 = vcmp.le.f32.partialorder %v690_v43, 0.7853982 }
 0x15a   : > { %v461_v8 = vand.u32 2147483647, %v460_v45  ;;  %v651_v32 = vsub.s32 %v647_v39, %v650_v7  ;;  %v470_v26 = vsel %vm1452_vm14, 0, %v468_v6  ;;  %vm579_vm1 = vcmp.eq.s32.totalorder %v577_v1, 0  ;;  %v794_v45 = vld [vmem:[%s1487_s25 + $0x8] sm:$0xff] }
 0x15b   : > { %v774_v22 = vxor.u32 2147483648, %v773_v0  ;;  %vm582_vm2 = vcmp.eq.s32.totalorder %v577_v1, 2  ;;  %v474_v31 = vand.u32 3, %v470_v26  ;;  %vm578_vm4 = vcmp.lt.s32.totalorder %v577_v1, 2 }
 0x15c   : > { %v464_v63 = vmul.f32 %v463_v51, %v461_v8  ;;  %v653_v11 = vsub.s32 0, %v651_v32  ;;  %vm576_vm5 = vweird.f32 %v1229_v37  ;;  %vm473_vm9 = vweird.f32 %v1226_v30 }
 0x15d   : > { %v1112_v17 = vpop.eup %1111  ;;  %v775_v14 = vsel %vm692_vm0, %v774_v22, %v773_v0  ;;  %vm475_vm6 = vcmp.lt.s32.totalorder %v474_v31, 2  ;;  %vm479_vm7 = vcmp.eq.s32.totalorder %v474_v31, 2  ;;  %vm476_vm8 = vcmp.eq.s32.totalorder %v474_v31, 0  ;;  %v917_v31 = vpop.permute.xlu1 %916 }
 0x15e   : > { %v465_v16 = vxor.u32 2147483648, %v464_v63  ;;  %v1033_v3 = vmin.u32 %v653_v11, %v651_v32  ;;  %v1114_v18 = vpop.eup %1113  ;;  %v583_v53 = vxor.u32 2147483648, %v1112_v17  ;;  %v778_v15 = vsel %vm1476_vm3, %v1231_v38, %v775_v14 }
 0x15f   : > { %v580_v10 = vxor.u32 2147483648, %v1114_v18  ;;  %vm812_vm10 = vcmask 261120   ;;  %v776_v12 = vsub.s32 4, %v1353_v2  ;;  %vm589_vm11 = vcmp.lt.s32.totalorder %v1241_v54, 0 }
 0x160   : > { %v466_v50 = vsel %vm383_vm13, %v465_v16, %v464_v63  ;;  %v655_v20 = vclz %v1033_v3  ;;  %v584_v29 = vsel %vm582_vm2, %v583_v53, %v1114_v18  ;;  %vm588_vm12 = vcmp.le.f32.partialorder %v587_v23, 0.7853982  ;;  %v796_v53 = vld [vmem:[%s1487_s25 + $0x18] sm:$0xff] }
 0x161   : > { %v469_v60 = vsel %vm1452_vm14, %v1226_v30, %v466_v50  ;;  %v581_v4 = vsel %vm579_vm1, %v1112_v17, %v580_v10  ;;  %v673_v48 = vsub.s32 4, %v1440_v57 }
 0x162   : > { %1115 = vcosq.f32 %v469_v60  ;;  %v1034_v21 = vadd.s32 4294967294, %v655_v20  ;;  %v585_v36 = vsel %vm578_vm4, %v581_v4, %v584_v29  ;;  %vm679_vm4 = vweird.f32 %v1241_v54 }
 0x163   : > { %1117 = vsinq.f32 %v469_v60  ;;  %v586_v44 = vsel %vm576_vm5, nan, %v585_v36  ;;  %v674_v60 = vsel %vm589_vm11, %v673_v48, %v1440_v57  ;;  %vm938_vm5 = vcmask 392192  }
 0x164   : > { %vm1035_vm15 = vcmp.lt.s32.totalorder %v1034_v21, 0  ;;  %1119 = vcosq.f32 %v778_v15  ;;  %v798_v37 = vadd.f32 %v794_v45, %v586_v44  ;;  %v676_v23 = vsel %vm588_vm12, 0, %v674_v60 }
 0x165   : > { %v658_v55 = vsel %vm1035_vm15, 0, %v1034_v21  ;;  %1121 = vsinq.f32 %v778_v15  ;;  %v680_v46 = vand.u32 3, %v676_v23  ;;  %v795_v21 = vld [vmem:[%s1487_s25 + $0x10] sm:$0xff] }
 0x166   : > { %v659_v28 = vsub.s32 32, %v658_v55  ;;  %v663_v61 = vsub.s32 4294967266, %v658_v55  ;;  %v660_v41 = vshll.u32 %v651_v32, %v658_v55  ;;  %v777_v32 = vsel %vm692_vm0, %v776_v12, %v1353_v2 }
 0x167   : > { %v779_v5 = vsel %vm1476_vm3, 0, %v777_v32  ;;  %vm685_vm0 = vcmp.eq.s32.totalorder %v680_v46, 2  ;;  %vm682_vm1 = vcmp.eq.s32.totalorder %v680_v46, 0  ;;  %vm681_vm2 = vcmp.lt.s32.totalorder %v680_v46, 2 }
 0x168   : > { %v661_v33 = vshrl.u32 %v643_v27, %v659_v28  ;;  %v664_v34 = vadd.s32 127, %v663_v61  ;;  %v783_v11 = vand.u32 3, %v779_v5  ;;  %vm782_vm3 = vweird.f32 %v1231_v38  ;;  %v1040_v28 = vld [vmem:[%s1533_s6] ss:$0 sm:$0xff] }
 0x16a   : > { %v662_v47 = vor.u32 %v661_v33, %v660_v41  ;;  %v665_v58 = vshll.u32 %v664_v34, 23  ;;  %vm785_vm13 = vcmp.eq.s32.totalorder %v783_v11, 0  ;;  %vm788_vm14 = vcmp.eq.s32.totalorder %v783_v11, 2  ;;  %v922_v41 = vpop.permute.xlu0 %921 }
 0x16b   : > { %vm784_vm15 = vcmp.lt.s32.totalorder %v783_v11, 2 }
 0x16c   : > { %v666_v39 = vor.u32 4788187, %v665_v58  ;;  %v669_v51 = vcvt.s32.f32 %v662_v47 }
 0x16e   : > { %v667_v8 = vand.u32 2147483647, %v666_v39 }
 0x16f   : > { %v1116_v52 = vpop.eup %1115 }
 0x170   : > { %v1118_v24 = vpop.eup %1117  ;;  %v480_v43 = vxor.u32 2147483648, %v1116_v52  ;;  %v670_v62 = vmul.f32 %v669_v51, %v667_v8 }
 0x171   : > { %v477_v25 = vxor.u32 2147483648, %v1118_v24  ;;  %v1120_v56 = vpop.eup %1119 }
 0x172   : > { %v481_v40 = vsel %vm479_vm7, %v480_v43, %v1118_v24  ;;  %v671_v7 = vxor.u32 2147483648, %v670_v62  ;;  %v1122_v50 = vpop.eup %1121  ;;  %v789_v9 = vxor.u32 2147483648, %v1120_v56  ;;  %v927_v24 = vpop.permute.xlu1 %926 }
 0x173   : > { %v478_v42 = vsel %vm476_vm8, %v1116_v52, %v477_v25  ;;  %v786_v13 = vxor.u32 2147483648, %v1122_v50  ;;  %v932_v43 = vpop.permute.xlu0 %931 }
 0x174   : > { %v482_v19 = vsel %vm475_vm6, %v478_v42, %v481_v40  ;;  %v672_v16 = vsel %vm589_vm11, %v671_v7, %v670_v62  ;;  %v790_v2 = vsel %vm788_vm14, %v789_v9, %v1122_v50 }
 0x175   : > { %v483_v59 = vsel %vm473_vm9, nan, %v482_v19  ;;  %v675_v30 = vsel %vm588_vm12, %v1241_v54, %v672_v16  ;;  %v787_v3 = vsel %vm785_vm13, %v1120_v56, %v786_v13 }
 0x176   : > { %v797_v63 = vadd.f32 %v793_v49, %v483_v59  ;;  %1123 = vcosq.f32 %v675_v30  ;;  %v791_v1 = vsel %vm784_vm15, %v787_v3, %v790_v2 }
 0x177   : > { %1125 = vsinq.f32 %v675_v30  ;;  %v792_v10 = vsel %vm782_vm3, nan, %v791_v1 }
 0x178   : > { %1063 = vmatprep.mubr.msk.f32.mxu0 %vm812_vm10, %v797_v63  ;;  %v800_v27 = vadd.f32 %v796_v53, %v792_v10 }
 0x179   : > { %1064 = vmatmul.mubr.msk.f32.vlgmr.msra.gmra.mxu0 %vm812_vm10, %v798_v37 }
 0x183   : > { %v1124_v17 = vpop.eup %1123 }
 0x184   : > { %v1126_v0 = vpop.eup %1125  ;;  %v686_v18 = vxor.u32 2147483648, %v1124_v17 }
 0x185   : > { %v683_v20 = vxor.u32 2147483648, %v1126_v0 }
 0x186   : > { %v687_v57 = vsel %vm685_vm0, %v686_v18, %v1126_v0 }
 0x187   : > { %v684_v6 = vsel %vm682_vm1, %v1124_v17, %v683_v20 }
 0x188   : > { %v688_v22 = vsel %vm681_vm2, %v684_v6, %v687_v57 }
 0x189   : > { %v689_v26 = vsel %vm679_vm4, nan, %v688_v22 }
 0x18a   : > { %v799_v55 = vadd.f32 %v795_v21, %v689_v26 }
 0x18c   : > { %1066 = vmatprep.mubr.msk.f32.mxu1 %vm812_vm10, %v799_v55 }
 0x18d   : > { %1067 = vmatmul.mubr.msk.f32.vlgmr.msra.gmra.mxu1 %vm812_vm10, %v800_v27 }
 0x239   : > { %v1065_v61 = vpop.f32.mrf.mxu0 }
 0x23a   : > { %v897_v14 = vadd.f32 %v1065_v61, %v1040_v28 }
 0x23b   : > { %v891_v38 = vpop.f32.mrf.mxu0 }
 0x23c   : > { %v892_v4 = vadd.f32 %v1040_v28, %v891_v38  ;;  %1127 = vtanh.f32 %v897_v14 }
 0x23e   : > { %1129 = vtanh.f32 %v892_v4 }
 0x249   : > { %v1128_v54 = vpop.eup %1127 }
 0x24a   : > { %v935_v34 = vmul.f32 %v1128_v54, %v922_v41 }
 0x24b   : > { %v1130_v29 = vpop.eup %1129 }
 0x24c   : > { %v934_v33 = vmul.f32 %v1130_v29, %v917_v31  ;;  %940 = vst.msk [vmem:[%s303_s8 + $0x8] sm:$0xff] %vm938_vm5, %v935_v34 }
 0x24d   : > { %v1068_v35 = vpop.f32.mrf.mxu1 }
 0x24e   : > { %939 = vst.msk [vmem:[%s303_s8] sm:$0xff] %vm938_vm5, %v934_v33  ;;  %v907_v52 = vadd.f32 %v1068_v35, %v1040_v28 }
 0x24f   : > { %v901_v15 = vpop.f32.mrf.mxu1 }
 0x250   : > { %v902_v36 = vadd.f32 %v1040_v28, %v901_v15  ;;  %1131 = vtanh.f32 %v907_v52 }
 0x252   : > { %1133 = vtanh.f32 %v902_v36 }
 0x25d   : > { %v1132_v47 = vpop.eup %1131 }
 0x25e   : > { %v937_v39 = vmul.f32 %v1132_v47, %v932_v43 }
 0x25f   : > { %v1134_v58 = vpop.eup %1133 }
 0x260   : > { %v936_v25 = vmul.f32 %v1134_v58, %v927_v24  ;;  %942 = vst.msk [vmem:[%s303_s8 + $0x18] sm:$0xff] %vm938_vm5, %v937_v39 }
 0x262   : > { %941 = vst.msk [vmem:[%s303_s8 + $0x10] sm:$0xff] %vm938_vm5, %v936_v25 }
 0x263 PF: > { %s18_s26 = sadd.s32 1, %s1141_s26  }
 0x264   : > { %p15_p4 = scmp.ge.s32.totalorder %s18_s26, 4  }
 0x266   :  { %17 = sbr.rel (!%p15_p4) target bundleno = 2 (0x2), region = 81 }

</bundles_post_ra>
